<compile_context>
chip_gen: v5e
topology: v5e:2x2
jax: 0.10.0
libtpu: 0.0.40
codegen_flags: <defaults>
</compile_context>

<pallas_src>
import functools
import math

import jax
import jax.numpy as jnp
from jax.experimental import pallas as pl
from jax.experimental.pallas import tpu as pltpu

_LANE = 128


def _vmem_capacity_bytes():
    """Per-core VMEM capacity (v5e/v6e 128 MiB, v7x 64 MiB); conservative fallback."""
    get_info = getattr(pltpu, "get_tpu_info", None)
    if get_info is not None:
        try:
            cap = getattr(get_info(), "vmem_capacity_bytes", None)
            if cap:
                return int(cap)
        except Exception:
            pass
    return 64 * 1024 * 1024


def _conv_tile(x_ref, w_ref, *, K, stride, tile_l):
    """K accumulating MXU dots -> float32 [C_out, TILE_L].

    x_ref: [stride, C_in, TILE_WIN]   (stride phase, channel, grouped position)
    w_ref: [K, C_out, C_in]           (tap-major, resident)
    """
    acc = None
    for t in range(K):                  # static tap loop
        q, p = divmod(t, stride)        # grouped-position shift / stride phase
        d = jnp.dot(w_ref[t], x_ref[p, :, q:q + tile_l],
                    preferred_element_type=jnp.float32)
        acc = d if acc is None else acc + d
    return acc                          # [C_out, TILE_L] float32


def _conv_stats_kernel(x_ref, w_ref, stats_ref, *, K, stride, tile_l, l_out, mask_tail):
    """Conv tile + per-channel partial BN stats (sum, sum of squares)."""
    acc = _conv_tile(x_ref, w_ref, K=K, stride=stride, tile_l=tile_l)
    if mask_tail:  # zero contributions of the padded tail of the last L tile
        pos = pl.program_id(1) * tile_l + jax.lax.broadcasted_iota(
            jnp.int32, (1, tile_l), 1)
        acc = jnp.where(pos < l_out, acc, 0.0)
    s = jnp.sum(acc, axis=1, keepdims=True)              # [C_out, 1]
    sq = jnp.sum(acc * acc, axis=1, keepdims=True)       # [C_out, 1]
    stats_ref[...] = jnp.concatenate([s, sq], axis=1)    # [C_out, 2]


def _conv_affine_relu_kernel(x_ref, w_ref, ss_ref, o_ref, *, K, stride, tile_l):
    """Conv tile + folded BN affine (y = acc*scale + shift) + ReLU, lane-dense store."""
    acc = _conv_tile(x_ref, w_ref, K=K, stride=stride, tile_l=tile_l)
    y = acc * ss_ref[:, 0:1] + ss_ref[:, 1:2]
    o_ref[...] = jnp.maximum(y, 0.0).astype(o_ref.dtype)


def conv_bn_relu(x_ncl, weight_oik, gamma, beta, *, stride=1, eps=1e-5,
                 compute_dtype=None, max_tile_l=1024):
    """Equivalent of convolution(k, inp_dim, out_dim, stride, with_bn=True).forward.

    x_ncl:      [N, C_in, L]      (PyTorch NCL layout)
    weight_oik: [C_out, C_in, K]  (PyTorch Conv1d weight, no bias)
    gamma/beta: [C_out]           (BatchNorm1d affine params; train-mode batch stats)
    compute_dtype: e.g. jnp.bfloat16 on v6e/v7x for 2x MXU rate (f32 accumulation).
    """
    out_dtype = x_ncl.dtype
    if compute_dtype is not None:
        x_ncl = x_ncl.astype(compute_dtype)
        weight_oik = weight_oik.astype(compute_dtype)

    N, C_in, L = x_ncl.shape
    C_out, _, K = weight_oik.shape
    S = int(stride)
    pad = (K - 1) // 2
    L_out = (L + 2 * pad - K) // S + 1
    q_max = (K - 1) // S

    # ---- L-tile size from the chip's VMEM budget (generation-specific) ---------------
    xi = jnp.dtype(x_ncl.dtype).itemsize
    oi = jnp.dtype(out_dtype).itemsize
    cap = _vmem_capacity_bytes()
    budget = int(cap * 0.7)                               # headroom for compiler scratch
    w_bytes = 2 * K * C_out * C_in * xi                   # double-buffered weight block
    per_col = 2 * S * C_in * xi + 2 * C_out * oi + 2 * C_out * 4   # x + out + f32 acc
    max_cols = max(_LANE, (budget - w_bytes - (1 << 20)) // max(per_col, 1))
    cap_cols = (max_cols // _LANE) * _LANE
    user_cap = max(_LANE, (int(max_tile_l) // _LANE) * _LANE)
    tile_cap = max(_LANE, min(user_cap, cap_cols))
    if L_out <= tile_cap:
        T, TILE_L = 1, L_out          # one exact tile: no halo duplication, no masking
    else:
        TILE_L = tile_cap             # multiple of 128 -> unmasked lane-dense stores
        T = -(-L_out // TILE_L)
    mask_tail = (T * TILE_L != L_out)

    # ---- input prep (stays NCL): zero-pad L (conv halo + tile tail), regroup stride
    #      phases onto their own axis so every in-kernel tap slice is lane-contiguous.
    L_g_total = max(T * TILE_L + q_max, (pad + L + S - 1) // S)
    Lp = S * L_g_total
    x_p = jnp.pad(x_ncl, ((0, 0), (0, 0), (pad, Lp - pad - L)))
    x_g = x_p.reshape(N, C_in, L_g_total, S).transpose(0, 3, 1, 2)   # [N, S, C_in, L_g]

    if T == 1:
        TILE_WIN = L_g_total
        x_tiles = x_g[:, None]                                        # [N,1,S,C_in,L_g]
    else:
        # TODO(synk): the per-tile halo slab duplicates q_max columns per tile (one extra
        #             HBM pass over x); a pl.ANY + manual-DMA halo fetch would avoid it.
        TILE_WIN = TILE_L + q_max
        x_tiles = jnp.stack(
            [x_g[..., i * TILE_L:i * TILE_L + TILE_WIN] for i in range(T)], axis=1)

    # ---- weight: [C_out, C_in, K] -> [K, C_out, C_in] (tap-major, resident in VMEM) --
    w_k = jnp.transpose(weight_oik, (2, 0, 1))

    x_spec = pl.BlockSpec((None, None, S, C_in, TILE_WIN), lambda n, i: (n, i, 0, 0, 0))
    w_spec = pl.BlockSpec((K, C_out, C_in), lambda n, i: (0, 0, 0))
    cparams = pltpu.CompilerParams(
        dimension_semantics=("parallel", "parallel"),
        vmem_limit_bytes=min(int(cap * 0.8), 100 * 1024 * 1024))

    x_bytes = int(x_tiles.size * xi)
    w_bytes_io = int(w_k.size * xi)
    flops = int(2 * N * T * TILE_L * C_out * C_in * K)

    # ---- stage 1: conv + per-(batch, L-tile) partial BN statistics --------------------
    stats = pl.pallas_call(
        functools.partial(_conv_stats_kernel, K=K, stride=S, tile_l=TILE_L,
                          l_out=L_out, mask_tail=mask_tail),
        out_shape=jax.ShapeDtypeStruct((N, T, C_out, 2), jnp.float32),
        grid=(N, T),
        in_specs=[x_spec, w_spec],
        out_specs=pl.BlockSpec((None, None, C_out, 2), lambda n, i: (n, i, 0, 0)),
        compiler_params=cparams,
        cost_estimate=pl.CostEstimate(
            flops=flops, transcendentals=0,
            bytes_accessed=x_bytes + w_bytes_io + int(N * T * C_out * 2 * 4)),
    )(x_tiles, w_k)

    # ---- fold BN (batch mean/var, biased) + affine into per-channel scale/shift -------
    # TODO(synk): one-pass E[x^2]-E[x]^2 can lose precision when |mean| >> std; switch
    #             to a shifted / Welford accumulation if activations can be large.
    count = float(N * L_out)
    tot = jnp.sum(stats, axis=(0, 1))                     # [C_out, 2]
    mean = tot[:, 0] / count
    var = jnp.maximum(tot[:, 1] / count - mean * mean, 0.0)
    scale = gamma.astype(jnp.float32) * jax.lax.rsqrt(var + eps)
    shift = beta.astype(jnp.float32) - mean * scale
    ss = jnp.stack([scale, shift], axis=1)                # [C_out, 2] merged operand

    # ---- stage 2: conv (recomputed; cheaper than an f32 HBM round trip) + BN + ReLU ---
    out = pl.pallas_call(
        functools.partial(_conv_affine_relu_kernel, K=K, stride=S, tile_l=TILE_L),
        out_shape=jax.ShapeDtypeStruct((N, C_out, L_out), out_dtype),
        grid=(N, T),
        in_specs=[x_spec, w_spec,
                  pl.BlockSpec((C_out, 2), lambda n, i: (0, 0))],
        out_specs=pl.BlockSpec((None, C_out, TILE_L), lambda n, i: (n, 0, i)),
        compiler_params=cparams,
        cost_estimate=pl.CostEstimate(
            flops=flops, transcendentals=0,
            bytes_accessed=x_bytes + w_bytes_io + int(N * C_out * L_out * oi)),
    )(x_tiles, w_k, ss)

    return out   # [N, C_out, L_out] — already PyTorch NCL layout, no wrapper transpose


def _reference(x, w, gamma, beta, *, stride=1, eps=1e-5):
    """Pure-JAX reference: Conv1d(pad=(k-1)//2, no bias) + train-mode BN + ReLU."""
    pad = (w.shape[2] - 1) // 2
    conv = jax.lax.conv_general_dilated(
        x, w, window_strides=(stride,), padding=[(pad, pad)],
        dimension_numbers=("NCH", "OIH", "NCH"))
    mean = jnp.mean(conv, axis=(0, 2), keepdims=True)
    var = jnp.mean((conv - mean) ** 2, axis=(0, 2), keepdims=True)
    xhat = (conv - mean) * jax.lax.rsqrt(var + eps)
    y = xhat * gamma.reshape(1, -1, 1) + beta.reshape(1, -1, 1)
    return jnp.maximum(y, 0.0)


if __name__ == "__main__":
    # convolution(k=3, inp_dim=4, out_dim=8, stride=1, with_bn=True)
    N, C_in, C_out, L, K = 2, 4, 8, 16, 3

    key = jax.random.PRNGKey(0)
    kx, kw, kg, kb = jax.random.split(key, 4)
    x = jax.random.normal(kx, (N, C_in, L), dtype=jnp.float32)

    # deterministic Conv1d weight (kaiming-uniform-style bound); no bias since with_bn=True
    bound = 1.0 / math.sqrt(C_in * K)
    weight = jax.random.uniform(kw, (C_out, C_in, K), jnp.float32, -bound, bound)
    # BN affine params (non-trivial, to exercise the folded scale/shift path)
    gamma = 1.0 + 0.1 * jax.random.normal(kg, (C_out,), jnp.float32)
    beta = 0.1 * jax.random.normal(kb, (C_out,), jnp.float32)

    # stride=1 (module default), single-tile path
    out1 = jax.block_until_ready(conv_bn_relu(x, weight, gamma, beta, stride=1))
    ref1 = _reference(x, weight, gamma, beta, stride=1)
    assert out1.shape == ref1.shape, (out1.shape, ref1.shape)
    assert jnp.allclose(out1, ref1, atol=1e-4, rtol=1e-4), "stride=1 mismatch vs reference"

    # stride=2 (phase-regrouped path)
    out2 = jax.block_until_ready(conv_bn_relu(x, weight, gamma, beta, stride=2))
    ref2 = _reference(x, weight, gamma, beta, stride=2)
    assert out2.shape == ref2.shape, (out2.shape, ref2.shape)
    assert jnp.allclose(out2, ref2, atol=1e-4, rtol=1e-4), "stride=2 mismatch vs reference"

    # long sequence with forced L tiling (halo slab + partial last tile + stats masking)
    L3 = 200
    x3 = jax.random.normal(jax.random.PRNGKey(1), (N, C_in, L3), dtype=jnp.float32)
    out3 = jax.block_until_ready(
        conv_bn_relu(x3, weight, gamma, beta, stride=1, max_tile_l=128))
    ref3 = _reference(x3, weight, gamma, beta, stride=1)
    assert out3.shape == ref3.shape, (out3.shape, ref3.shape)
    assert jnp.allclose(out3, ref3, atol=1e-4, rtol=1e-4), "tiled-L mismatch vs reference"

    print("KERNEL_OK")
</pallas_src>

<mosaic_0001>
module attributes {stable_mosaic.version = 11 : i64} {
  func.func @_conv_stats_kernel(%arg0: i32, %arg1: i32, %arg2: memref<1x1x1x4x18xf32, #tpu.memory_space<vmem>>, %arg3: memref<3x8x4xf32, #tpu.memory_space<vmem>>, %arg4: memref<1x1x8x2xf32, #tpu.memory_space<vmem>>) attributes {dimension_semantics = [#tpu.dimension_semantics<parallel>, #tpu.dimension_semantics<parallel>], iteration_bounds = array<i64: 2, 1>, scalar_prefetch = 0 : i64, scratch_operands = 0 : i64, tpu.core_type = #tpu.core_type<tc>, window_params = [{transform_indices = @transform_0, window_bounds = array<i64: 1, 1, 1, 4, 18>}, {pipeline_mode = #tpu.pipeline_mode<synchronous>, transform_indices = @transform_1, window_bounds = array<i64: 3, 8, 4>}, {transform_indices = @transform_2, window_bounds = array<i64: 1, 1, 8, 2>}]} {
    %c0 = arith.constant 0 : index
    %c0_0 = arith.constant 0 : index
    %c0_1 = arith.constant 0 : index
    %0 = vector.load %arg3[%c0, %c0_0, %c0_1] : memref<3x8x4xf32, #tpu.memory_space<vmem>>, vector<1x8x4xf32>
    %1 = vector.shape_cast %0 : vector<1x8x4xf32> to vector<8x4xf32>
    %c0_2 = arith.constant 0 : index
    %c0_3 = arith.constant 0 : index
    %c0_4 = arith.constant 0 : index
    %c0_5 = arith.constant 0 : index
    %c0_6 = arith.constant 0 : index
    %2 = vector.load %arg2[%c0_2, %c0_3, %c0_4, %c0_5, %c0_6] : memref<1x1x1x4x18xf32, #tpu.memory_space<vmem>>, vector<1x1x1x4x16xf32>
    %3 = vector.shape_cast %2 : vector<1x1x1x4x16xf32> to vector<4x16xf32>
    %cst = arith.constant dense<0.000000e+00> : vector<8x16xf32>
    %4 = tpu.matmul %1, %3, %cst {dimension_numbers = #tpu.dot_dimension_numbers<[1], [0], [0], [1], [0, 0, 1, 1], [], []>} : vector<8x4xf32>, vector<4x16xf32>, vector<8x16xf32> -> vector<8x16xf32>
    %c1 = arith.constant 1 : index
    %c0_7 = arith.constant 0 : index
    %c0_8 = arith.constant 0 : index
    %5 = vector.load %arg3[%c1, %c0_7, %c0_8] : memref<3x8x4xf32, #tpu.memory_space<vmem>>, vector<1x8x4xf32>
    %6 = vector.shape_cast %5 : vector<1x8x4xf32> to vector<8x4xf32>
    %c0_9 = arith.constant 0 : index
    %c0_10 = arith.constant 0 : index
    %c0_11 = arith.constant 0 : index
    %c0_12 = arith.constant 0 : index
    %c1_13 = arith.constant 1 : index
    %7 = vector.load %arg2[%c0_9, %c0_10, %c0_11, %c0_12, %c1_13] : memref<1x1x1x4x18xf32, #tpu.memory_space<vmem>>, vector<1x1x1x4x16xf32>
    %8 = vector.shape_cast %7 : vector<1x1x1x4x16xf32> to vector<4x16xf32>
    %cst_14 = arith.constant dense<0.000000e+00> : vector<8x16xf32>
    %9 = tpu.matmul %6, %8, %cst_14 {dimension_numbers = #tpu.dot_dimension_numbers<[1], [0], [0], [1], [0, 0, 1, 1], [], []>} : vector<8x4xf32>, vector<4x16xf32>, vector<8x16xf32> -> vector<8x16xf32>
    %10 = arith.addf %4, %9 : vector<8x16xf32>
    %c2 = arith.constant 2 : index
    %c0_15 = arith.constant 0 : index
    %c0_16 = arith.constant 0 : index
    %11 = vector.load %arg3[%c2, %c0_15, %c0_16] : memref<3x8x4xf32, #tpu.memory_space<vmem>>, vector<1x8x4xf32>
    %12 = vector.shape_cast %11 : vector<1x8x4xf32> to vector<8x4xf32>
    %c0_17 = arith.constant 0 : index
    %c0_18 = arith.constant 0 : index
    %c0_19 = arith.constant 0 : index
    %c0_20 = arith.constant 0 : index
    %c2_21 = arith.constant 2 : index
    %13 = vector.load %arg2[%c0_17, %c0_18, %c0_19, %c0_20, %c2_21] : memref<1x1x1x4x18xf32, #tpu.memory_space<vmem>>, vector<1x1x1x4x16xf32>
    %14 = vector.shape_cast %13 : vector<1x1x1x4x16xf32> to vector<4x16xf32>
    %cst_22 = arith.constant dense<0.000000e+00> : vector<8x16xf32>
    %15 = tpu.matmul %12, %14, %cst_22 {dimension_numbers = #tpu.dot_dimension_numbers<[1], [0], [0], [1], [0, 0, 1, 1], [], []>} : vector<8x4xf32>, vector<4x16xf32>, vector<8x16xf32> -> vector<8x16xf32>
    %16 = arith.addf %10, %15 : vector<8x16xf32>
    %cst_23 = arith.constant dense<0.000000e+00> : vector<8xf32>
    %17 = vector.multi_reduction <add>, %16, %cst_23 [1] : vector<8x16xf32> to vector<8xf32>
    %18 = vector.shape_cast %17 : vector<8xf32> to vector<8x1xf32>
    %19 = arith.mulf %16, %16 : vector<8x16xf32>
    %cst_24 = arith.constant dense<0.000000e+00> : vector<8xf32>
    %20 = vector.multi_reduction <add>, %19, %cst_24 [1] : vector<8x16xf32> to vector<8xf32>
    %21 = vector.shape_cast %20 : vector<8xf32> to vector<8x1xf32>
    %22 = tpu.concatenate %18, %21 in 1 : vector<8x1xf32>, vector<8x1xf32> -> vector<8x2xf32>
    %c0_25 = arith.constant 0 : index
    %c0_26 = arith.constant 0 : index
    %c0_27 = arith.constant 0 : index
    %c0_28 = arith.constant 0 : index
    %23 = vector.load %arg4[%c0_25, %c0_26, %c0_27, %c0_28] : memref<1x1x8x2xf32, #tpu.memory_space<vmem>>, vector<1x1x8x2xf32>
    %24 = vector.shape_cast %23 : vector<1x1x8x2xf32> to vector<8x2xf32>
    %25 = vector.shape_cast %22 : vector<8x2xf32> to vector<1x1x8x2xf32>
    tpu.vector_store %arg4[%c0_25, %c0_26, %c0_27, %c0_28], %25 {strides = array<i32>} : memref<1x1x8x2xf32, #tpu.memory_space<vmem>>, vector<1x1x8x2xf32>,
    return
  }
  func.func @transform_0(%arg0: i32, %arg1: i32) -> (i32, i32, i32, i32, i32) {
    %c0_i32 = arith.constant 0 : i32
    %c0_i32_0 = arith.constant 0 : i32
    %c0_i32_1 = arith.constant 0 : i32
    %c0_i32_2 = arith.constant 0 : i32
    return %arg0, %arg1, %c0_i32, %c0_i32_0, %c0_i32_1 : i32, i32, i32, i32, i32
  }
  func.func @transform_1(%arg0: i32, %arg1: i32) -> (i32, i32, i32) {
    %c0_i32 = arith.constant 0 : i32
    %c0_i32_0 = arith.constant 0 : i32
    %c0_i32_1 = arith.constant 0 : i32
    %c0_i32_2 = arith.constant 0 : i32
    return %c0_i32, %c0_i32_0, %c0_i32_1 : i32, i32, i32
  }
  func.func @transform_2(%arg0: i32, %arg1: i32) -> (i32, i32, i32, i32) {
    %c0_i32 = arith.constant 0 : i32
    %c0_i32_0 = arith.constant 0 : i32
    %c0_i32_1 = arith.constant 0 : i32
    return %arg0, %arg1, %c0_i32, %c0_i32_0 : i32, i32, i32, i32
  }
}

</mosaic_0001>

<bundles_post_ra>
// kernel: tpu_custom_call.1
= control target key start
LH: loop header
LB: loop body
LE: loop exit
PB: predicated region body
PF: predicated region fallthrough
CT: control target
= control target key end

     0   :  { %s429_s9 = smov 0   ;;  %s431_s10 = smov 0   ;;  %s475_s0 = inlined_call_operand.vmem [shape: f32[2,1,1,4,18], index: 0, kind: input, shape index: {}]   ;;  %s476_s1 = inlined_call_operand.vmem [shape: f32[3,8,4], index: 1, kind: input, shape index: {}]   ;;  %s477_s2 = inlined_call_operand.vmem [shape: f32[2,1,8,2], index: 2, kind: output, shape index: {}]  }
   0x1   :  { %s433_s11 = smov 0  }
   0x2 LB: > { %s24_s12 = sadd.s32 1, %s406_s10  ;;  %p349_p0 = scmp.ge.s32.totalorder %s410_s11, 1  ;;  %s410_s11 = sphi %s433_s11, %s12_s11   ;;  %s406_s10 = sphi %s431_s10, %s479_s10   ;;  %s402_s9 = sphi %s429_s9, %s478_s9  }
   0x3   : > { %p26_p1 = scmp.ge.s32.totalorder %s24_s12, 2  ;;  %p130_p2 = scmp.lt.s32.totalorder %s410_s11, 3 }
   0x5   : > { %s481_s12 = smov (%p26_p1, %s24_s12), 0  ;;  %p131_p3 = pnand %p349_p0, %p130_p2 }
   0x6   : > { %p156_p4 = scmp.lt.s32.totalorder (!%p131_p3), %s402_s9, 1  ;;  %s412_s17 = smov (!%p131_p3), 126  }
   0x7   : > { %134 = sbr.rel (%p131_p3) target bundleno = 397 (0x18d), region = 28  ;;  %s413_s18 = smov (!%p131_p3), 127  }
   0xc   : > { %s483_s9 = smov (!%p156_p4, %s402_s9), 1  ;;  %vm181_vm0 = vcmask 1043456   ;;  %vm177_vm1 = vcmask 31744   ;;  %v170_v1 = vld [vmem:[%s476_s1] sm:$0xff]  ;;  %v357_v2 = vld [vmem:[%s476_s1 + $0x10] sm:$0xff]  ;;  %v352_v4 = vld [vmem:[%s476_s1 + $0x8] sm:$0xff] }
   0xd   : > { %s350_s13 = sshll.u32 %s483_s9, 2  ;;  %vm259_vm2 = vcmask 130048   ;;  %s351_s25 = sshll.u32 %s483_s9, 3  ;;  %vm267_vm3 = vcmask 7168   ;;  %vm269_vm4 = vcmask 15360  }
   0xe   : > { %s162_s16 = scalar_lea.vmem %s475_s0, %s350_s13  ;;  %s169_s28 = scalar_lea.vmem %s477_s2, %s351_s25 }
   0xf   : > { %v171_v0 = vld [vmem:[%s162_s16] sm:$0xf] }
  0x10   : > { %231 = vrot.lane.b32.xlu0 %v171_v0, %s412_s17  ;;  %355 = vmatpush.msk.msra.mxu1 %vm181_vm0, %v171_v0 }
  0x11   : > { %356 = vmatmul.msk.f32.vlgmr.msra.gmra.mxu1 %vm177_vm1, %v170_v1 }
  0x18   : > { %175 = vrot.lane.b32.xlu0 %v171_v0, %s413_s18 }
  0x82   : > { %v232_v3 = vpop.permute.xlu0 %231 }
  0x83   : > { %358 = vmatpush.msk.msra.mxu2 %vm181_vm0, %v232_v3 }
  0x84   : > { %359 = vmatmul.msk.f32.vlgmr.msra.gmra.mxu2 %vm177_vm1, %v357_v2 }
  0x8a   : > { %v176_v5 = vpop.permute.xlu0 %175 }
  0x8b   : > { %353 = vmatpush.msk.msra.mxu0 %vm181_vm0, %v176_v5 }
  0x8c   : > { %354 = vmatmul.msk.f32.vlgmr.msra.gmra.mxu0 %vm177_vm1, %v352_v4 }
  0x8e   : > { %v226_v6 = vpop.f32.mrf.mxu1 }
 0x107   : > { %v255_v8 = vpop.f32.mrf.mxu2 }
 0x109   : > { %v201_v7 = vpop.f32.mrf.mxu0 }
 0x10a   : > { %v227_v9 = vadd.f32 %v226_v6, %v201_v7 }
 0x10c   : > { %v258_v10 = vadd.f32 %v255_v8, %v227_v9 }
 0x10e   : > { %v260_v11 = vsel %vm259_vm2, %v258_v10, 0.0  ;;  %v263_v12 = vmul.f32 %v258_v10, %v258_v10 }
 0x10f   : > { %261 = vadd.xlane.f32.xlu1 %v260_v11 }
 0x110   : > { %v264_v13 = vsel %vm259_vm2, %v263_v12, 0.0 }
 0x117   : > { %265 = vadd.xlane.f32.xlu1 %v264_v13 }
 0x182   : > { %v262_v14 = vpop.xlane.xlu1 %261 }
 0x18a   : > { %v266_v15 = vpop.xlane.xlu1 %265 }
 0x18b   : > { %v268_v16 = vsel %vm267_vm3, %v262_v14, %v266_v15 }
 0x18c   : > { %270 = vst.msk [vmem:[%s169_s28] sm:$0xff] %vm269_vm4, %v268_v16 }
 0x18d PF: > { %s12_s11 = sadd.s32 1, %s410_s11   ;;  %s478_s9 = smov %s406_s10 }
 0x18e   : > { %p9_p5 = scmp.ge.s32.totalorder %s12_s11, 4   ;;  %s479_s10 = smov %s481_s12 }
 0x190   :  { %11 = sbr.rel (!%p9_p5) target bundleno = 2 (0x2), region = 60 }

</bundles_post_ra>
